<compile_context>
chip_gen: v7x
topology: tpu7x:2x2x1
jax: 0.10.0
libtpu: 0.0.40
codegen_flags: <defaults>
</compile_context>

<pallas_src>
import functools
import math

import jax
import jax.numpy as jnp
from jax.experimental import pallas as pl
from jax.experimental.pallas import tpu as pltpu

EPS = 1e-7
_LANES = 128

# 7th-order Hastings-style minimax fit (A&S 4.4.47 family):
#   acos(x) ~= sqrt(1 - x) * poly(x) on [0, 1], |err| <= 2e-8 in exact
#   arithmetic (~1e-6 realized in f32).  Only mul/add/sqrt, so it lowers on
#   every TPU generation (there is no native acos on the EUP).
_ACOS_COEFFS = (
    -0.0012624911,
    0.0066700901,
    -0.0170881256,
    0.0308918810,
    -0.0501743046,
    0.0889789874,
    -0.2145988016,
    1.5707963050,
)


def _acos_f32(x):
    """Elementwise arccos via sqrt(1-|x|)*poly(|x|) with reflection for x<0."""
    ax = jnp.abs(x)
    p = jnp.float32(_ACOS_COEFFS[0])
    for c in _ACOS_COEFFS[1:]:
        p = p * ax + jnp.float32(c)
    pos = jnp.sqrt(1.0 - ax) * p
    return jnp.where(x >= 0.0, pos, jnp.float32(math.pi) - pos)


def _theta_partial_kernel(p_ref, out_ref, *, batch, block_b):
    """One (18, block_b) packed tile -> one lane-dense (1, 128) partial row.

    Packed sublane layout (batch on lanes):
      rows  0..7  : targets  elements 0..7
      rows  8..15 : outputs  elements 0..7
      row   16    : targets  element 8
      row   17    : outputs  element 8
    """
    t8 = p_ref[0:8, :].astype(jnp.float32)
    o8 = p_ref[8:16, :].astype(jnp.float32)
    # trace(T @ O^T) per batch lane: full-block VPU product + XLU sublane
    # reduce, plus the 9th-element tail rows.
    trace = jnp.sum(t8 * o8, axis=0, keepdims=True)
    trace = trace + (
        p_ref[16:17, :].astype(jnp.float32) * p_ref[17:18, :].astype(jnp.float32)
    )

    cos = (trace - 1.0) * 0.5
    cos = jnp.clip(cos, -1.0 + EPS, 1.0 - EPS)
    theta = _acos_f32(cos)  # (1, block_b)

    # Mask lanes past the true batch size.  The ragged last block may read
    # padded-zero or stale VMEM lanes; clip keeps them bounded and this mask
    # zeroes them, so they never reach the sum.  Do not remove.
    lane = jax.lax.broadcasted_iota(jnp.int32, (1, block_b), 1)
    valid = (pl.program_id(0) * block_b + lane) < batch
    theta = jnp.where(valid, theta, 0.0)

    # Fold the block_b lanes down to a single lane-dense 128-wide row so the
    # store is an unmasked vst; the wrapper sums across blocks/lanes.
    partial = theta[:, 0:_LANES]
    for g in range(1, block_b // _LANES):
        partial = partial + theta[:, g * _LANES : (g + 1) * _LANES]
    out_ref[...] = partial


def _round_up(x, m):
    return (x + m - 1) // m * m


def compute_loss(outputs, targets, *, block_b=8192, bf16_transfer=False):
    """Pallas equivalent of ComputeLoss.forward.

    outputs, targets: (B, 3, 3) float (batches of 3x3 rotation matrices).
    Returns a scalar float32: mean geodesic angle between the rotations.
    """
    # TODO(synk): add a custom_vjp (d acos/d cos = -rsqrt(1-cos^2), masked at
    # the clamp bounds) if this loss is ever differentiated for training.
    assert outputs.shape == targets.shape and outputs.shape[1:] == (3, 3)
    B = outputs.shape[0]

    # Pack both inputs into a single (18, B) array (one fused XLA relayout
    # pass: reshape + concat + pad-to-128 + transpose).
    # TODO(synk): producing the (18, B) layout directly upstream would remove
    # this relayout pass entirely (~1.5-2x end-to-end on this mem-bound op).
    t = targets.reshape(B, 9)
    o = outputs.reshape(B, 9)
    packed = jnp.concatenate(
        [t[:, 0:8], o[:, 0:8], t[:, 8:9], o[:, 8:9]], axis=1
    )  # (B, 18)
    b128 = _round_up(B, _LANES)
    if b128 != B:
        packed = jnp.pad(packed, ((0, b128 - B), (0, 0)))
    packed = jnp.transpose(packed)  # (18, b128)
    if bf16_transfer:
        # Halves HBM read bytes; kernel upcasts to f32 (numerics owner: bf16
        # rotation entries lose ~3 decimal digits — fine for a mean loss).
        packed = packed.astype(jnp.bfloat16)

    # Tile size: multiple of 128, big enough to amortize grid-step overhead,
    # capped near ceil(B/2) so >=2 blocks exist (v7x has 2 TensorCores).
    half = _round_up(max(1, -(-B // 2)), _LANES)
    tb = max(_LANES, min(_round_up(block_b, _LANES), half))
    n_blocks = -(-B // tb)

    partials = pl.pallas_call(
        functools.partial(_theta_partial_kernel, batch=B, block_b=tb),
        out_shape=jax.ShapeDtypeStruct((1, n_blocks * _LANES), jnp.float32),
        grid=(n_blocks,),
        in_specs=[pl.BlockSpec((18, tb), lambda i: (0, i))],
        out_specs=pl.BlockSpec((1, _LANES), lambda i: (0, i)),
        compiler_params=pltpu.CompilerParams(
            dimension_semantics=("parallel",)
        ),
    )(packed)

    return jnp.sum(partials) / jnp.float32(B)


def _reference_loss(outputs, targets):
    # Pure-JAX mirror of the PyTorch forward, for a correctness sanity check.
    m = jnp.einsum("bik,bjk->bij", targets, outputs)
    cos = (m[:, 0, 0] + m[:, 1, 1] + m[:, 2, 2] - 1.0) / 2.0
    theta = jnp.arccos(jnp.clip(cos, -1.0 + EPS, 1.0 - EPS))
    return jnp.mean(theta)


if __name__ == "__main__":
    key = jax.random.PRNGKey(0)
    k1, k2 = jax.random.split(key)
    B = 8

    # Deterministic "rotation-like" inputs: orthonormalize random matrices.
    a = jax.random.normal(k1, (B, 3, 3), dtype=jnp.float32)
    b = jax.random.normal(k2, (B, 3, 3), dtype=jnp.float32)
    outputs, _ = jnp.linalg.qr(a)
    targets, _ = jnp.linalg.qr(b)
    outputs = outputs.astype(jnp.float32)
    targets = targets.astype(jnp.float32)

    loss = compute_loss(outputs, targets)
    jax.block_until_ready(loss)

    ref = _reference_loss(outputs, targets)
    jax.block_until_ready(ref)
    assert jnp.allclose(loss, ref, atol=2e-5, rtol=1e-5), (loss, ref)

    print("KERNEL_OK")
</pallas_src>

<mosaic_0001>
module attributes {stable_mosaic.version = 11 : i64} {
  func.func @_theta_partial_kernel(%arg0: i32, %arg1: memref<18x128xf32, #tpu.memory_space<vmem>>, %arg2: memref<1x128xf32, #tpu.memory_space<vmem>>) attributes {dimension_semantics = [#tpu.dimension_semantics<parallel>], iteration_bounds = array<i64: 1>, scalar_prefetch = 0 : i64, scratch_operands = 0 : i64, tpu.core_type = #tpu.core_type<tc>, window_params = [{transform_indices = @transform_0, window_bounds = array<i64: 18, 128>}, {transform_indices = @transform_1, window_bounds = array<i64: 1, 128>}]} {
    %c0 = arith.constant 0 : index
    %c0_0 = arith.constant 0 : index
    %0 = vector.load %arg1[%c0, %c0_0] : memref<18x128xf32, #tpu.memory_space<vmem>>, vector<8x128xf32>
    %c8 = arith.constant 8 : index
    %c0_1 = arith.constant 0 : index
    %1 = vector.load %arg1[%c8, %c0_1] : memref<18x128xf32, #tpu.memory_space<vmem>>, vector<8x128xf32>
    %2 = arith.mulf %0, %1 : vector<8x128xf32>
    %cst = arith.constant dense<0.000000e+00> : vector<128xf32>
    %3 = vector.multi_reduction <add>, %2, %cst [0] : vector<8x128xf32> to vector<128xf32>
    %4 = vector.shape_cast %3 : vector<128xf32> to vector<1x128xf32>
    %c16 = arith.constant 16 : index
    %c0_2 = arith.constant 0 : index
    %5 = vector.load %arg1[%c16, %c0_2] : memref<18x128xf32, #tpu.memory_space<vmem>>, vector<1x128xf32>
    %c17 = arith.constant 17 : index
    %c0_3 = arith.constant 0 : index
    %6 = vector.load %arg1[%c17, %c0_3] : memref<18x128xf32, #tpu.memory_space<vmem>>, vector<1x128xf32>
    %7 = arith.mulf %5, %6 : vector<1x128xf32>
    %8 = arith.addf %4, %7 : vector<1x128xf32>
    %cst_4 = arith.constant 1.000000e+00 : f32
    %9 = vector.broadcast %cst_4 : f32 to vector<1x128xf32>
    %10 = arith.subf %8, %9 : vector<1x128xf32>
    %cst_5 = arith.constant 5.000000e-01 : f32
    %11 = vector.broadcast %cst_5 : f32 to vector<1x128xf32>
    %12 = arith.mulf %10, %11 : vector<1x128xf32>
    %cst_6 = arith.constant -0.99999988 : f32
    %cst_7 = arith.constant 0.99999988 : f32
    %13 = vector.broadcast %cst_6 : f32 to vector<1x128xf32>
    %14 = arith.maximumf %13, %12 : vector<1x128xf32>
    %15 = vector.broadcast %cst_7 : f32 to vector<1x128xf32>
    %16 = arith.minimumf %15, %14 : vector<1x128xf32>
    %17 = math.absf %16 : vector<1x128xf32>
    %cst_8 = arith.constant -0.0012624911 : f32
    %18 = vector.broadcast %cst_8 : f32 to vector<1x128xf32>
    %19 = arith.mulf %18, %17 : vector<1x128xf32>
    %cst_9 = arith.constant 6.670090e-03 : f32
    %20 = vector.broadcast %cst_9 : f32 to vector<1x128xf32>
    %21 = arith.addf %19, %20 : vector<1x128xf32>
    %22 = arith.mulf %21, %17 : vector<1x128xf32>
    %cst_10 = arith.constant -0.0170881264 : f32
    %23 = vector.broadcast %cst_10 : f32 to vector<1x128xf32>
    %24 = arith.addf %22, %23 : vector<1x128xf32>
    %25 = arith.mulf %24, %17 : vector<1x128xf32>
    %cst_11 = arith.constant 0.0308918804 : f32
    %26 = vector.broadcast %cst_11 : f32 to vector<1x128xf32>
    %27 = arith.addf %25, %26 : vector<1x128xf32>
    %28 = arith.mulf %27, %17 : vector<1x128xf32>
    %cst_12 = arith.constant -0.0501743034 : f32
    %29 = vector.broadcast %cst_12 : f32 to vector<1x128xf32>
    %30 = arith.addf %28, %29 : vector<1x128xf32>
    %31 = arith.mulf %30, %17 : vector<1x128xf32>
    %cst_13 = arith.constant 0.0889789909 : f32
    %32 = vector.broadcast %cst_13 : f32 to vector<1x128xf32>
    %33 = arith.addf %31, %32 : vector<1x128xf32>
    %34 = arith.mulf %33, %17 : vector<1x128xf32>
    %cst_14 = arith.constant -0.214598805 : f32
    %35 = vector.broadcast %cst_14 : f32 to vector<1x128xf32>
    %36 = arith.addf %34, %35 : vector<1x128xf32>
    %37 = arith.mulf %36, %17 : vector<1x128xf32>
    %cst_15 = arith.constant 1.57079625 : f32
    %38 = vector.broadcast %cst_15 : f32 to vector<1x128xf32>
    %39 = arith.addf %37, %38 : vector<1x128xf32>
    %cst_16 = arith.constant 1.000000e+00 : f32
    %40 = vector.broadcast %cst_16 : f32 to vector<1x128xf32>
    %41 = arith.subf %40, %17 : vector<1x128xf32>
    %42 = math.sqrt %41 : vector<1x128xf32>
    %43 = arith.mulf %42, %39 : vector<1x128xf32>
    %cst_17 = arith.constant 0.000000e+00 : f32
    %44 = vector.broadcast %cst_17 : f32 to vector<1x128xf32>
    %45 = arith.cmpf oge, %16, %44 : vector<1x128xf32>
    %cst_18 = arith.constant 3.14159274 : f32
    %46 = vector.broadcast %cst_18 : f32 to vector<1x128xf32>
    %47 = arith.subf %46, %43 : vector<1x128xf32>
    %48 = arith.select %45, %43, %47 : vector<1x128xi1>, vector<1x128xf32>
    %49 = tpu.iota {dimensions = array<i32: 1>} : vector<1x128xi32>
    %c128_i32 = arith.constant 128 : i32
    %50 = arith.muli %arg0, %c128_i32 : i32
    %51 = vector.broadcast %50 : i32 to vector<1x128xi32>
    %52 = arith.addi %51, %49 : vector<1x128xi32>
    %c8_i32 = arith.constant 8 : i32
    %53 = vector.broadcast %c8_i32 : i32 to vector<1x128xi32>
    %54 = arith.cmpi slt, %52, %53 : vector<1x128xi32>
    %cst_19 = arith.constant 0.000000e+00 : f32
    %55 = vector.broadcast %cst_19 : f32 to vector<1x128xf32>
    %56 = arith.select %54, %48, %55 : vector<1x128xi1>, vector<1x128xf32>
    %c0_20 = arith.constant 0 : index
    %c0_21 = arith.constant 0 : index
    %57 = vector.load %arg2[%c0_20, %c0_21] : memref<1x128xf32, #tpu.memory_space<vmem>>, vector<1x128xf32>
    tpu.vector_store %arg2[%c0_20, %c0_21], %56 {strides = array<i32>} : memref<1x128xf32, #tpu.memory_space<vmem>>, vector<1x128xf32>,
    return
  }
  func.func @transform_0(%arg0: i32) -> (i32, i32) {
    %c0_i32 = arith.constant 0 : i32
    %c0_i32_0 = arith.constant 0 : i32
    return %c0_i32, %arg0 : i32, i32
  }
  func.func @transform_1(%arg0: i32) -> (i32, i32) {
    %c0_i32 = arith.constant 0 : i32
    %c0_i32_0 = arith.constant 0 : i32
    return %c0_i32, %arg0 : i32, i32
  }
}

</mosaic_0001>

<bundles_post_ra>
// kernel: tpu_custom_call.1
= control target key start
LH: loop header
LB: loop body
LE: loop exit
PB: predicated region body
PF: predicated region fallthrough
CT: control target
= control target key end

     0   :  { %6 = vsyncpa [#allocation3], 0  ;;  %s184_s0 = inlined_call_operand.hbm [shape: f32[18,128], index: 0, kind: input, shape index: {}]   ;;  %s185_s1 = inlined_call_operand.hbm [shape: f32[1,128], index: 1, kind: output, shape index: {}]  }
   0x1   :  { %7 = vsyncpa [#allocation4], 0  ;;  %s146_s6 = smov [#allocation2]   ;;  %s98_s10 = scalar_lea.hbm %s184_s0, 384 }
   0x2   :  { %s13_s7 = sshll.u32 %s146_s6, 4  ;;  %p99_p0 = scmp.ne.s32.totalorder %s184_s0, %s98_s10  ;;  %s14_s7 = int_to_ptr.vmem [resolvable:$true] %s13_s7 }
   0x3   :  { %p102_p1 = scmp.lt.u32.totalorder %s98_s10, %s184_s0 }
   0x5   :  { %p104_p2 = pnand %p102_p1, %p99_p0 }
   0x7   :  { %107 = shalt.err (!%p104_p2)
}
   0x8   :  { %s108_s15 = scalar_lea.vmem %s14_s7, 384  ;;  %p113_p4 = scmp.lt.s32.totalorder %s14_s7, %s14_s7 }
   0x9   :  { %p109_p3 = scmp.ne.s32.totalorder %s14_s7, %s108_s15  ;;  %p114_p5 = scmp.lt.s32.totalorder %s108_s15, %s108_s15 }
   0xb   :  { %p115_p6 = por %p114_p5, %p113_p4 }
   0xd   :  { %p116_p7 = pnand %p115_p6, %p109_p3 }
   0xf   :  { %119 = shalt.err (!%p116_p7)
}
  0x10   :  { %s147_s16 = smov 128   ;;  %s148_s17 = smov 8  }
  0x11   :  { %19 = dma.hbm_to_vmem [thread:$0]  %s184_s0, 384, %s14_s7, [#allocation3], %s147_s16, %s147_s16, %s148_s17  }
  0x12   :  { %142 = dma.done.wait [#allocation3], 384  }
  0x13   :  { %143 = vsyncadd [#allocation3], 4294966912  ;;  %v23_v0 = vld [vmem:[#allocation2] sm:$0xff]  ;;  %v24_v1 = vld [vmem:[#allocation2 + $0x8] sm:$0xff]  ;;  %v67_v34 = vlaneseq  ;;  %s149_s0 = smov [#allocation5]  }
  0x14   :  { %v25_v2 = vmul.f32 %v24_v1, %v23_v0  ;;  %v32_v6 = vld [vmem:[#allocation2 + $0x10] sm:$0x1]  ;;  %v33_v7 = vld [vmem:[#allocation2 + $0x11] sm:$0x1]  ;;  %s81_s20 = sshll.u32 %s149_s0, 4  ;;  %s82_s20 = int_to_ptr.vmem [resolvable:$true] %s81_s20 }
  0x15   :  { %v34_v10 = vmul.f32 %v33_v7, %v32_v6  ;;  %v68_v38 = vand.u32 127, %v67_v34  ;;  %s120_s21 = scalar_lea.vmem %s82_s20, 16  ;;  %s124_s22 = scalar_lea.vmem %s82_s20, 32 }
  0x16   :  { %v26_v3 = vrot.slane %v25_v2, 4  ;;  %p121_p8 = scmp.ne.s32.totalorder %s82_s20, %s120_s21  ;;  %p125_p9 = scmp.lt.s32.totalorder %s82_s20, %s82_s20 }
  0x17   :  { %vm72_vm3 = vcmp.lt.s32.totalorder %v68_v38, 8  ;;  %p126_p10 = scmp.lt.s32.totalorder %s124_s22, %s120_s21 }
  0x18   :  { %v27_v4 = vadd.f32 %v26_v3, %v25_v2 }
  0x19   :  { %p127_p11 = por %p126_p10, %p125_p9 }
  0x1a   :  { %v28_v5 = vrot.slane %v27_v4, 2 }
  0x1b   :  { %p128_p12 = pnand %p127_p11, %p121_p8 }
  0x1c   :  { %v29_v8 = vadd.f32 %v28_v5, %v27_v4 }
  0x1e   :  { %v30_v9 = vrot.slane %v29_v8, 1 }
  0x20   :  { %v31_v11 = vadd.f32 %v30_v9, %v29_v8 }
  0x22   :  { %v35_v12 = vadd.f32 %v34_v10, %v31_v11 }
  0x24   :  { %v90_v13 = vadd.f32 -1.0, %v35_v12 }
  0x26   :  { %v37_v14 = vmul.f32 0.5, %v90_v13 }
  0x28   :  { %v91_v15 = vclamps-f32 %v37_v14, 0.9999999 }
  0x2a   :  { %v40_v16 = vand.u32 2147483647, %v91_v15  ;;  %vm64_vm2 = vcmp.ge.f32.partialorder %v91_v15, 0.0 }
  0x2c   :  { %v41_v17 = vmul.f32 -0.0012624911, %v40_v16  ;;  %v55_v18 = vsub.f32 1.0, %v40_v16 }
  0x2e   :  { %v42_v19 = vadd.f32 0.00667009, %v41_v17  ;;  %96 = vrsqrt.f32 %v55_v18  ;;  %vm58_vm0 = vcmp.eq.f32.partialorder %v55_v18, inf  ;;  %v61_v31 = vand.u32 2147483648, %v55_v18 }
  0x2f   :  { %vm60_vm1 = vcmp.eq.f32.partialorder %v55_v18, 0.0 }
  0x30   :  { %v43_v20 = vmul.f32 %v42_v19, %v40_v16 }
  0x32   :  { %v44_v21 = vadd.f32 -0.017088126, %v43_v20 }
  0x34   :  { %v45_v22 = vmul.f32 %v44_v21, %v40_v16 }
  0x36   :  { %v46_v23 = vadd.f32 0.03089188, %v45_v22 }
  0x38   :  { %v47_v24 = vmul.f32 %v46_v23, %v40_v16  ;;  %v97_v26 = vpop.eup %96 }
  0x39   :  { %v57_v29 = vmul.f32 %v97_v26, %v55_v18 }
  0x3a   :  { %v48_v25 = vadd.f32 -0.050174303, %v47_v24 }
  0x3b   :  { %v59_v33 = vsel %vm58_vm0, %v55_v18, %v57_v29 }
  0x3c   :  { %v49_v27 = vmul.f32 %v48_v25, %v40_v16  ;;  %v62_v36 = vsel %vm60_vm1, %v61_v31, %v59_v33 }
  0x3e   :  { %v50_v28 = vadd.f32 0.08897899, %v49_v27 }
  0x40   :  { %v51_v30 = vmul.f32 %v50_v28, %v40_v16 }
  0x42   :  { %v52_v32 = vadd.f32 -0.2145988, %v51_v30 }
  0x44   :  { %v53_v35 = vmul.f32 %v52_v32, %v40_v16 }
  0x46   :  { %v54_v37 = vadd.f32 1.5707963, %v53_v35 }
  0x48   :  { %v63_v39 = vmul.f32 %v62_v36, %v54_v37 }
  0x4a   :  { %v65_v40 = vsub.f32 3.1415927, %v63_v39 }
  0x4c   :  { %v66_v41 = vsel %vm64_vm2, %v63_v39, %v65_v40 }
  0x4d   :  { %v73_v42 = vsel %vm72_vm3, %v66_v41, 0.0 }
  0x4e   :  { %74 = vst [vmem:[#allocation5] sm:$0x1] %v73_v42 }
  0x4f   :  { %131 = shalt.err (!%p128_p12)
}
  0x50   :  { %s132_s25 = scalar_lea.hbm %s185_s1, 16 }
  0x51   :  { %p133_p13 = scmp.ne.s32.totalorder %s185_s1, %s132_s25  ;;  %p136_p0 = scmp.lt.u32.totalorder %s132_s25, %s185_s1 }
  0x53   :  { %p138_p1 = pnand %p136_p0, %p133_p13 }
  0x55   :  { %141 = shalt.err (!%p138_p1)
}
  0x56   :  { %84 = dma.vmem_to_hbm [thread:$0]  %s82_s20, 16, %s185_s1, [#allocation4]  }
  0x57   :  { %144 = dma.done.wait [#allocation4], 16  }
  0x58   :  { %145 = vsyncadd [#allocation4], 4294967280 }
  0x59   :  { %88 = vsyncpa [#allocation3], 1 }
  0x5a   :  { %89 = vsyncpa [#allocation4], 1 }

</bundles_post_ra>
